<compile_context>
chip_gen: v7x
topology: tpu7x:2x2x1
jax: 0.10.0
libtpu: 0.0.40
codegen_flags: <defaults>
</compile_context>

<pallas_src>
import functools
import math

import jax
import jax.numpy as jnp
from jax.experimental import pallas as pl
from jax.experimental.pallas import tpu as pltpu

_EPS = 1e-12
_EPS_SQ = _EPS * _EPS  # 1e-24, a normal f32


def _cosine_linear_kernel(x_ref, w_ref, row_scale_ref, col_scale_ref, o_ref,
                          *, mxu_bf16):
    # x_ref:         (TB, H)   input tile (native dtype)
    # w_ref:         (TO, H)   weight tile (native dtype)
    # row_scale_ref: (TB, 1)   f32  1/max(||x_b||, eps)           (hoisted)
    # col_scale_ref: (1, TO)   f32  sigma/max(||w_o||, eps)       (hoisted)
    # o_ref:         (TB, TO)  output tile
    x = x_ref[...]
    w = w_ref[...]
    if mxu_bf16 and x.dtype == jnp.float32:
        # Numerics-affecting option: bf16 operands on the MXU (full-rate on
        # v5e/v6e), still f32 accumulation; the norms stay f32.
        x = x.astype(jnp.bfloat16)
        w = w.astype(jnp.bfloat16)

    # Raw matmul on the MXU: contract the shared last (H) axis, no explicit
    # transpose of W, f32 accumulation.
    raw = jax.lax.dot_general(
        x, w,
        dimension_numbers=(((1,), (1,)), ((), ())),
        preferred_element_type=jnp.float32,
    )  # (TB, TO) f32

    # Row scale (1/||x||) and column scale (sigma/||w||) are precomputed.
    o_ref[...] = (raw * row_scale_ref[...] * col_scale_ref[...]).astype(o_ref.dtype)


def cosine_linear(x, weight, sigma, *, block_b=None, block_o=None, mxu_bf16=False):
    """sigma * (normalize(x, dim=1) @ normalize(weight, dim=1).T) via Pallas."""
    B, H = x.shape
    O, Hw = weight.shape
    assert H == Hw

    # Hoisted scale factors (computed ONCE, tiny vs. the matmul HBM traffic):
    #   row_scale[b] = 1 / max(||x[b,:]||, eps)   == rsqrt(max(sum(x*x), eps^2))
    #   col_scale[o] = sigma / max(||W[o,:]||, eps)   (sigma folded in)
    sigma_f = jnp.asarray(sigma, jnp.float32).reshape(())
    xf = x.astype(jnp.float32)
    row_scale = jax.lax.rsqrt(
        jnp.maximum(jnp.sum(xf * xf, axis=1, keepdims=True), _EPS_SQ))      # (B, 1)
    wf = weight.astype(jnp.float32)
    col_scale = (sigma_f * jax.lax.rsqrt(
        jnp.maximum(jnp.sum(wf * wf, axis=1), _EPS_SQ))).reshape(1, O)      # (1, O)

    # ---- tile-size selection against a per-chip VMEM budget -----------------
    try:
        phys_vmem = pltpu.get_tpu_info().vmem_capacity_bytes
    except Exception:
        phys_vmem = 64 * 1024 * 1024  # conservative fallback (v7x-sized)
    budget = min((phys_vmem * 3) // 4, 100 * 1024 * 1024)

    x_bytes = x.dtype.itemsize
    w_bytes = weight.dtype.itemsize
    o_bytes = x.dtype.itemsize

    def footprint(bb, bo):
        # double-buffered x, W, out tiles + the tiny scale vectors
        return (2 * bb * H * x_bytes + 2 * bo * H * w_bytes
                + 2 * bb * bo * o_bytes + 2 * bb * 4 + 2 * bo * 4)

    if block_b is None:
        block_b = 512
    if block_o is None:
        block_o = 512
    block_b = min(block_b, B)
    block_o = min(block_o, O)
    while footprint(block_b, block_o) > budget and max(block_b, block_o) > 128:
        if block_b >= block_o:
            block_b = max(128, block_b // 2)
        else:
            block_o = max(128, block_o // 2)

    nb = pl.cdiv(B, block_b)
    no = pl.cdiv(O, block_o)

    # ---- grid order: keep the bigger operand resident, restream the smaller -
    # batch-major (i outer) restreams W nb times; O-major (j outer) restreams x
    # no times. Pick whichever moves fewer HBM bytes.
    w_restream_bytes = nb * O * H * w_bytes
    x_restream_bytes = no * B * H * x_bytes
    o_major = x_restream_bytes < w_restream_bytes

    if o_major:
        grid = (no, nb)
        x_map = lambda j, i: (i, 0)
        w_map = lambda j, i: (j, 0)
        rs_map = lambda j, i: (i, 0)
        cs_map = lambda j, i: (0, j)
        out_map = lambda j, i: (i, j)
    else:
        grid = (nb, no)
        x_map = lambda i, j: (i, 0)
        w_map = lambda i, j: (j, 0)
        rs_map = lambda i, j: (i, 0)
        cs_map = lambda i, j: (0, j)
        out_map = lambda i, j: (i, j)

    fp = footprint(block_b, block_o)
    vmem_limit = int(min(budget, max(32 * 1024 * 1024, fp + fp // 2)))

    kernel = functools.partial(_cosine_linear_kernel, mxu_bf16=mxu_bf16)

    return pl.pallas_call(
        kernel,
        out_shape=jax.ShapeDtypeStruct((B, O), x.dtype),
        grid=grid,
        in_specs=[
            pl.BlockSpec((block_b, H), x_map),      # x tile, full H
            pl.BlockSpec((block_o, H), w_map),      # W tile, full H
            pl.BlockSpec((block_b, 1), rs_map),     # hoisted per-row 1/||x||
            pl.BlockSpec((1, block_o), cs_map),     # hoisted sigma/||w|| per column
        ],
        out_specs=pl.BlockSpec((block_b, block_o), out_map),
        compiler_params=pltpu.CompilerParams(
            # Both axes are independent -> v7x's two TensorCores each take a share.
            dimension_semantics=("parallel", "parallel"),
            vmem_limit_bytes=vmem_limit,
        ),
    )(x, weight, row_scale, col_scale)


def cosine_linear_ref(x, weight, sigma):
    xn = x / jnp.maximum(jnp.linalg.norm(x, axis=1, keepdims=True), _EPS)
    wn = weight / jnp.maximum(jnp.linalg.norm(weight, axis=1, keepdims=True), _EPS)
    return sigma * (xn @ wn.T)


if __name__ == "__main__":
    key = jax.random.PRNGKey(0)
    k_x, k_w, k_x2, k_w2 = jax.random.split(key, 4)

    # --- small case matching the module defaults -----------------------------
    hidden_dim, output_dim, batch = 32, 16, 8
    # Deterministic parameter init mirroring reset_parameters():
    # weight ~ U(-stdv, stdv) with stdv = 1/sqrt(hidden_dim); sigma = 1.0
    stdv = 1.0 / math.sqrt(hidden_dim)
    weight = jax.random.uniform(
        k_w, (output_dim, hidden_dim), jnp.float32, minval=-stdv, maxval=stdv
    )
    sigma = jnp.float32(1.0)
    x = jax.random.normal(k_x, (batch, hidden_dim), jnp.float32)

    out = jax.block_until_ready(cosine_linear(x, weight, sigma))
    ref = cosine_linear_ref(x, weight, sigma)
    assert out.shape == (batch, output_dim)
    assert jnp.allclose(out, ref, atol=1e-5, rtol=1e-5), "mismatch vs reference (small)"

    # --- larger case: explicit small blocks -> grid > 1 with a partial O tile,
    #     exercises the O-major (W-resident) grid order ------------------------
    H2, O2, B2 = 128, 384, 256
    stdv2 = 1.0 / math.sqrt(H2)
    weight2 = jax.random.uniform(k_w2, (O2, H2), jnp.float32, minval=-stdv2, maxval=stdv2)
    x2 = jax.random.normal(k_x2, (B2, H2), jnp.float32)
    ref2 = cosine_linear_ref(x2, weight2, sigma)

    out2 = jax.block_until_ready(
        cosine_linear(x2, weight2, sigma, block_b=128, block_o=256))
    assert out2.shape == (B2, O2)
    assert jnp.allclose(out2, ref2, atol=1e-5, rtol=1e-5), "mismatch vs reference (tiled)"

    # --- same case with default (large) tiles --------------------------------
    out3 = jax.block_until_ready(cosine_linear(x2, weight2, sigma))
    assert jnp.allclose(out3, ref2, atol=1e-5, rtol=1e-5), "mismatch vs reference (default tiles)"

    # --- optional bf16-on-MXU path (numerics-affecting, loose tolerance) -----
    out4 = jax.block_until_ready(cosine_linear(x2, weight2, sigma, mxu_bf16=True))
    assert jnp.allclose(out4, ref2, atol=2e-2, rtol=2e-2), "mismatch vs reference (bf16 MXU)"

    print("KERNEL_OK")
</pallas_src>

<mosaic_0001>
module attributes {stable_mosaic.version = 11 : i64} {
  func.func @_cosine_linear_kernel(%arg0: i32, %arg1: i32, %arg2: memref<8x32xf32, #tpu.memory_space<vmem>>, %arg3: memref<16x32xf32, #tpu.memory_space<vmem>>, %arg4: memref<8x1xf32, #tpu.memory_space<vmem>>, %arg5: memref<1x16xf32, #tpu.memory_space<vmem>>, %arg6: memref<8x16xf32, #tpu.memory_space<vmem>>) attributes {dimension_semantics = [#tpu.dimension_semantics<parallel>, #tpu.dimension_semantics<parallel>], iteration_bounds = array<i64: 1, 1>, scalar_prefetch = 0 : i64, scratch_operands = 0 : i64, tpu.core_type = #tpu.core_type<tc>, window_params = [{transform_indices = @transform_0, window_bounds = array<i64: 8, 32>}, {transform_indices = @transform_1, window_bounds = array<i64: 16, 32>}, {transform_indices = @transform_2, window_bounds = array<i64: 8, 1>}, {transform_indices = @transform_3, window_bounds = array<i64: 1, 16>}, {transform_indices = @transform_4, window_bounds = array<i64: 8, 16>}]} {
    %c0 = arith.constant 0 : index
    %c0_0 = arith.constant 0 : index
    %0 = vector.load %arg2[%c0, %c0_0] : memref<8x32xf32, #tpu.memory_space<vmem>>, vector<8x32xf32>
    %c0_1 = arith.constant 0 : index
    %c0_2 = arith.constant 0 : index
    %1 = vector.load %arg3[%c0_1, %c0_2] : memref<16x32xf32, #tpu.memory_space<vmem>>, vector<16x32xf32>
    %cst = arith.constant dense<0.000000e+00> : vector<8x16xf32>
    %2 = tpu.matmul %0, %1, %cst {dimension_numbers = #tpu.dot_dimension_numbers<[1], [1], [0], [0], [0, 0, 1, 0], [], []>} : vector<8x32xf32>, vector<16x32xf32>, vector<8x16xf32> -> vector<8x16xf32>
    %c0_3 = arith.constant 0 : index
    %c0_4 = arith.constant 0 : index
    %3 = vector.load %arg4[%c0_3, %c0_4] : memref<8x1xf32, #tpu.memory_space<vmem>>, vector<8x1xf32>
    %4 = vector.broadcast %3 : vector<8x1xf32> to vector<8x16xf32>
    %5 = arith.mulf %2, %4 : vector<8x16xf32>
    %c0_5 = arith.constant 0 : index
    %c0_6 = arith.constant 0 : index
    %6 = vector.load %arg5[%c0_5, %c0_6] : memref<1x16xf32, #tpu.memory_space<vmem>>, vector<1x16xf32>
    %7 = vector.broadcast %6 : vector<1x16xf32> to vector<8x16xf32>
    %8 = arith.mulf %5, %7 : vector<8x16xf32>
    %c0_7 = arith.constant 0 : index
    %c0_8 = arith.constant 0 : index
    %9 = vector.load %arg6[%c0_7, %c0_8] : memref<8x16xf32, #tpu.memory_space<vmem>>, vector<8x16xf32>
    tpu.vector_store %arg6[%c0_7, %c0_8], %8 {strides = array<i32>} : memref<8x16xf32, #tpu.memory_space<vmem>>, vector<8x16xf32>,
    return
  }
  func.func @transform_0(%arg0: i32, %arg1: i32) -> (i32, i32) {
    %c0_i32 = arith.constant 0 : i32
    %c0_i32_0 = arith.constant 0 : i32
    return %arg1, %c0_i32 : i32, i32
  }
  func.func @transform_1(%arg0: i32, %arg1: i32) -> (i32, i32) {
    %c0_i32 = arith.constant 0 : i32
    %c0_i32_0 = arith.constant 0 : i32
    return %arg0, %c0_i32 : i32, i32
  }
  func.func @transform_2(%arg0: i32, %arg1: i32) -> (i32, i32) {
    %c0_i32 = arith.constant 0 : i32
    %c0_i32_0 = arith.constant 0 : i32
    return %arg1, %c0_i32 : i32, i32
  }
  func.func @transform_3(%arg0: i32, %arg1: i32) -> (i32, i32) {
    %c0_i32 = arith.constant 0 : i32
    %c0_i32_0 = arith.constant 0 : i32
    return %c0_i32, %arg0 : i32, i32
  }
  func.func @transform_4(%arg0: i32, %arg1: i32) -> (i32, i32) {
    %c0_i32 = arith.constant 0 : i32
    return %arg1, %arg0 : i32, i32
  }
}

</mosaic_0001>

<bundles_post_ra>
// kernel: tpu_custom_call.1
= control target key start
LH: loop header
LB: loop body
LE: loop exit
PB: predicated region body
PF: predicated region fallthrough
CT: control target
= control target key end

     0   :  { %9 = vsyncpa [#allocation3], 0  ;;  %s288_s0 = inlined_call_operand.vmem [shape: f32[8,32], index: 0, kind: input, shape index: {}]   ;;  %s289_s1 = inlined_call_operand.hbm [shape: f32[16,32], index: 1, kind: input, shape index: {}]   ;;  %s290_s2 = inlined_call_operand.vmem [shape: f32[8,1], index: 2, kind: input, shape index: {}]   ;;  %s291_s3 = inlined_call_operand.vmem [shape: f32[1,16], index: 3, kind: input, shape index: {}]   ;;  %s292_s4 = inlined_call_operand.hbm [shape: f32[8,16], index: 4, kind: output, shape index: {}]  }
   0x1   :  { %10 = vsyncpa [#allocation4], 0  ;;  %s222_s15 = smov [#allocation2]   ;;  %s174_s19 = scalar_lea.hbm %s289_s1, 256 }
   0x2   :  { %s18_s16 = sshll.u32 %s222_s15, 4  ;;  %p175_p0 = scmp.ne.s32.totalorder %s289_s1, %s174_s19  ;;  %s19_s16 = int_to_ptr.vmem [resolvable:$true] %s18_s16 }
   0x3   :  { %p178_p1 = scmp.lt.u32.totalorder %s174_s19, %s289_s1 }
   0x5   :  { %p180_p2 = pnand %p178_p1, %p175_p0 }
   0x7   :  { %183 = shalt.err (!%p180_p2)
}
   0x8   :  { %s184_s24 = scalar_lea.vmem %s19_s16, 256  ;;  %p189_p4 = scmp.lt.s32.totalorder %s19_s16, %s19_s16 }
   0x9   :  { %p185_p3 = scmp.ne.s32.totalorder %s19_s16, %s184_s24  ;;  %p190_p5 = scmp.lt.s32.totalorder %s184_s24, %s184_s24 }
   0xb   :  { %p191_p6 = por %p190_p5, %p189_p4 }
   0xd   :  { %p192_p7 = pnand %p191_p6, %p185_p3 }
   0xf   :  { %195 = shalt.err (!%p192_p7)
}
  0x10   :  { %s223_s25 = smov 128   ;;  %s224_s26 = smov 8  }
  0x11   :  { %24 = dma.hbm_to_vmem [thread:$0]  %s289_s1, 256, %s19_s16, [#allocation3], %s223_s25, %s223_s25, %s224_s26  }
  0x12   :  { %218 = dma.done.wait [#allocation3], 256  }
  0x13   :  { %219 = vsyncadd [#allocation3], 4294967040  ;;  %v225_v0 = vmov 0.0|0.0   ;;  %vm226_vm0 = vmmov 0   ;;  %v227_v1 = vmov 0.0   ;;  %v228_v2 = vmov 0  }
  0x14   :  { %161 = vmatprep.subr.bf16.mxu0 %v225_v0  ;;  %158 = vmatprep.mubr.msk.f32.mxu0 %vm226_vm0, %v227_v1  ;;  %vm35_vm1 = vcmask 261120   ;;  %v33_v3 = vld [vmem:[#allocation2] sm:$0xff]  ;;  %v34_v4 = vld [vmem:[#allocation2 + $0x8] sm:$0xff]  ;;  %s229_s8 = smov [#allocation5]   ;;  %vm130_vm3 = vcmask 130048  }
  0x15   :  { %173 = vset.pattern.permute.xlu0 %v228_v2  ;;  %vm163_vm2 = vmpackc.low %vm35_vm1, %vm35_vm1  ;;  %v162_v5 = vpack.c.bf16 %v34_v4, %v33_v3  ;;  %v115_v6 = vld [vmem:[%s290_s2] sm:$0xff]  ;;  %s138_s9 = sshll.u32 %s229_s8, 4  ;;  %s139_s9 = int_to_ptr.vmem [resolvable:$true] %s138_s9 }
  0x16   :  { %118 = vperm.xlu0 %173, %v115_v6   ;;  %v32_v7 = vld [vmem:[%s288_s0] sm:$0xff]  ;;  %s196_s2 = scalar_lea.vmem %s139_s9, 128  ;;  %p201_p9 = scmp.lt.s32.totalorder %s139_s9, %s139_s9 }
  0x17   :  { %164 = vmatpush3.bf16.xpose.msk.msra.mxu0 %vm163_vm2, %v162_v5  ;;  %v150_v10 = vld [vmem:[%s291_s3] ss:$0 sm:$0xff]  ;;  %p197_p8 = scmp.ne.s32.totalorder %s139_s9, %s196_s2  ;;  %p202_p10 = scmp.lt.s32.totalorder %s196_s2, %s196_s2 }
  0x19   :  { %p203_p11 = por %p202_p10, %p201_p9 }
  0x1b   :  { %p204_p12 = pnand %p203_p11, %p197_p8 }
  0x1e   :  { %159 = vmatmul.mubr.msk.f32.vlgmr.msra.gmra.mrb[0].mxu0 %vm35_vm1, %v32_v7 }
  0x95   :  { %v119_v8 = vpop.permute.xlu0 %118 }
  0xf1   :  { %v111_v9 = vpop.f32.mrb[0].mxu0 }
  0xf2   :  { %v121_v11 = vmul.f32 %v119_v8, %v111_v9  ;;  %v160_v12 = vpop.f32.mrb[1].mxu0 }
  0xf4   :  { %v129_v13 = vmul.f32 %v150_v10, %v121_v11 }
  0xf6   :  { %131 = vst.msk [vmem:[#allocation5] sm:$0xff] %vm130_vm3, %v129_v13 }
  0xf7   :  { %207 = shalt.err (!%p204_p12)
}
  0xf8   :  { %s208_s11 = scalar_lea.hbm %s292_s4, 128 }
  0xf9   :  { %p209_p13 = scmp.ne.s32.totalorder %s292_s4, %s208_s11  ;;  %p212_p0 = scmp.lt.u32.totalorder %s208_s11, %s292_s4 }
  0xfb   :  { %p214_p1 = pnand %p212_p0, %p209_p13 }
  0xfd   :  { %217 = shalt.err (!%p214_p1)
}
  0xfe   :  { %141 = dma.vmem_to_hbm [thread:$0]  %s139_s9, 128, %s292_s4, [#allocation4]  }
  0xff   :  { %220 = dma.done.wait [#allocation4], 128  }
 0x100   :  { %221 = vsyncadd [#allocation4], 4294967168 }
 0x101   :  { %145 = vsyncpa [#allocation3], 1 }
 0x102   :  { %146 = vsyncpa [#allocation4], 1 }

</bundles_post_ra>
